<compile_context>
chip_gen: v7x
topology: tpu7x:2x2x1
jax: 0.10.0
libtpu: 0.0.40
codegen_flags: <defaults>
</compile_context>

<pallas_src>
import functools

import jax
import jax.numpy as jnp
from jax import lax
from jax.experimental import pallas as pl
from jax.experimental.pallas import tpu as pltpu

_LANE = 128
_SUBLANE = 8


def _round_up(n, m):
    return ((n + m - 1) // m) * m


def _dp_split_fwd_kernel(x_ref, w1_ref, b1_ref, w2_ref, b2_ref, logits_ref):
    """Fused 2-layer MLP forward for one batch tile (batch-on-lanes output).

    x:       [TB, Din]   f32  (cast to bf16 in-kernel)
    w1:      [H, Din]    bf16    b1: [H, 1]    f32
    w2:      [Dp8, H]    bf16    b2: [Dp8, 1]  f32
    logits:  [Dp8, TB]   f32  (batch on lanes -> lane-dense store)
    """
    # In-kernel bf16 cast of x (VPU), hidden under MXU / store slots.
    xb = x_ref[...].astype(w1_ref.dtype)

    # Layer 1 (transposed): h_t[j, b] = sum_k W1[j, k] * x[b, k]  -> [H, TB]
    h_t = lax.dot_general(w1_ref[...], xb, (((1,), (1,)), ((), ())),
                          preferred_element_type=jnp.float32)
    h_t = jnp.maximum(h_t + b1_ref[...], 0.0)

    # Layer 2 (last Linear of the wrapped model): z_t = W2 @ h_t -> [Dp8, TB]
    z_t = jnp.dot(w2_ref[...], h_t.astype(w2_ref.dtype),
                  preferred_element_type=jnp.float32)

    # Single lane-dense f32 store (batch axis on lanes, only real Dout rows +
    # at most 7 zero-padded rows).
    logits_ref[...] = z_t + b2_ref[...]


def prepare_params(w1, b1, w2, b2, *, compute_dtype=jnp.bfloat16):
    """One-time weight preparation (hoisted off the per-call path).

    PyTorch-convention weights [out, in] are kept as-is (the kernel computes in
    transposed form, so no transpose is needed), the final output-feature axis
    is zero-padded to a multiple of 8 sublanes, matmul operands are cast to
    bf16 and biases are reshaped to column vectors (f32).
    """
    H, Din = w1.shape
    Dout, H2 = w2.shape
    assert H2 == H
    d_p8 = _round_up(Dout, _SUBLANE)

    w1_c = w1.astype(compute_dtype)                                   # [H, Din]
    b1_c = b1.reshape(H, 1).astype(jnp.float32)                       # [H, 1]
    w2_c = jnp.zeros((d_p8, H), compute_dtype).at[:Dout, :].set(
        w2.astype(compute_dtype))                                     # [Dp8, H]
    b2_c = jnp.zeros((d_p8, 1), jnp.float32).at[:Dout, 0].set(
        b2.astype(jnp.float32))                                       # [Dp8, 1]
    return w1_c, b1_c, w2_c, b2_c, Dout


@functools.partial(jax.jit, static_argnames=("dout", "block_b"))
def dp_split_forward(x, w1_c, b1_c, w2_c, b2_c, *, dout, block_b=1024):
    """DPSplitModel.forward (training, feature_src): returns (logits, preds)."""
    B, Din = x.shape
    H = w1_c.shape[0]
    d_p8 = w2_c.shape[0]

    # v7x has 2 TensorCores; shard the batch-tile grid across them.
    try:
        kind = jax.devices()[0].device_kind.lower()
    except Exception:  # pragma: no cover - defensive
        kind = ""
    is_v7x = "v7" in kind

    # Batch tile: no batch padding; ragged last block handled by Pallas.
    tb = B if B <= block_b else block_b              # block_b is a mult. of 8/128
    if is_v7x and B > 2 * _LANE and B <= tb:
        # Ensure >= 2 grid steps so CORE_PARALLEL feeds both TensorCores.
        tb = min(tb, _round_up(pl.cdiv(B, 2), _LANE))
    n_steps = pl.cdiv(B, tb)

    dim_sem = ((pltpu.CORE_PARALLEL,) if (is_v7x and n_steps > 1)
               else (pltpu.PARALLEL,))

    logits_t = pl.pallas_call(
        _dp_split_fwd_kernel,
        out_shape=jax.ShapeDtypeStruct((d_p8, B), jnp.float32),
        grid_spec=pltpu.PrefetchScalarGridSpec(
            num_scalar_prefetch=0,
            grid=(n_steps,),
            in_specs=[
                pl.BlockSpec((tb, Din), lambda i: (i, 0)),   # x: streamed (f32)
                pl.BlockSpec((H, Din), lambda i: (0, 0)),    # weights: resident
                pl.BlockSpec((H, 1), lambda i: (0, 0)),
                pl.BlockSpec((d_p8, H), lambda i: (0, 0)),
                pl.BlockSpec((d_p8, 1), lambda i: (0, 0)),
            ],
            out_specs=pl.BlockSpec((d_p8, tb), lambda i: (0, i)),
        ),
        compiler_params=pltpu.CompilerParams(
            dimension_semantics=dim_sem,
            vmem_limit_bytes=48 * 1024 * 1024),
    )(x, w1_c, b1_c, w2_c, b2_c)

    # Restore the module's [B, Dout] layout (padded rows are exactly 0) and
    # compute preds = sigmoid(logits) as a trivial fused op over B x Dout.
    logits = logits_t[:dout, :].T
    preds = jax.nn.sigmoid(logits)
    return logits, preds


def _reference_forward(x, w1, b1, w2, b2, *, compute_dtype=jnp.bfloat16):
    """Pure-JAX reference with the same numerics (bf16 matmul, f32 elsewhere)."""
    xb = x.astype(compute_dtype)
    h = jnp.dot(xb, w1.T.astype(compute_dtype),
                preferred_element_type=jnp.float32) + b1.astype(jnp.float32)
    h = jnp.maximum(h, 0.0)
    z = jnp.dot(h.astype(compute_dtype), w2.T.astype(compute_dtype),
                preferred_element_type=jnp.float32) + b2.astype(jnp.float32)
    return z, jax.nn.sigmoid(z)


if __name__ == "__main__":
    # Small shapes consistent with the module (MLP feature input).
    B, Din, H, Dout = 8, 32, 32, 8

    key = jax.random.PRNGKey(0)
    kx, k1, k2, k3, k4 = jax.random.split(key, 5)

    x = jax.random.normal(kx, (B, Din), dtype=jnp.float32)

    # Deterministic PyTorch-Linear-style init: U(-1/sqrt(fan_in), 1/sqrt(fan_in))
    lim1 = 1.0 / (Din ** 0.5)
    lim2 = 1.0 / (H ** 0.5)
    w1 = jax.random.uniform(k1, (H, Din), jnp.float32, -lim1, lim1)   # [out, in]
    b1 = jax.random.uniform(k2, (H,), jnp.float32, -lim1, lim1)
    w2 = jax.random.uniform(k3, (Dout, H), jnp.float32, -lim2, lim2)  # [out, in]
    b2 = jax.random.uniform(k4, (Dout,), jnp.float32, -lim2, lim2)

    # One-time weight prep (sublane-pad Dout / bf16 cast / bias reshape).
    w1_c, b1_c, w2_c, b2_c, dout = prepare_params(w1, b1, w2, b2)

    logits, preds = dp_split_forward(x, w1_c, b1_c, w2_c, b2_c, dout=dout)
    jax.block_until_ready((logits, preds))

    ref_logits, ref_preds = _reference_forward(x, w1, b1, w2, b2)
    assert logits.shape == (B, Dout) and preds.shape == (B, Dout)
    assert jnp.allclose(logits, ref_logits, atol=1e-4, rtol=1e-4)
    assert jnp.allclose(preds, ref_preds, atol=1e-4, rtol=1e-4)

    # TODO(synk): CrypTen encryption, communicator broadcasts, DP noise and the
    # jacobian/layer-estimation backward protocols are multi-party runtime
    # machinery with no single-device tensor semantics; not modelled here.

    print("KERNEL_OK")
</pallas_src>

<mosaic_0001>
module attributes {stable_mosaic.version = 11 : i64} {
  func.func @_dp_split_fwd_kernel(%arg0: i32, %arg1: memref<8x32xf32, #tpu.memory_space<vmem>>, %arg2: memref<32x32xbf16, #tpu.memory_space<vmem>>, %arg3: memref<32x1xf32, #tpu.memory_space<vmem>>, %arg4: memref<8x32xbf16, #tpu.memory_space<vmem>>, %arg5: memref<8x1xf32, #tpu.memory_space<vmem>>, %arg6: memref<8x8xf32, #tpu.memory_space<vmem>>) attributes {dimension_semantics = [#tpu.dimension_semantics<parallel>], iteration_bounds = array<i64: 1>, scalar_prefetch = 0 : i64, scratch_operands = 0 : i64, tpu.core_type = #tpu.core_type<tc>, window_params = [{transform_indices = @transform_0, window_bounds = array<i64: 8, 32>}, {pipeline_mode = #tpu.pipeline_mode<synchronous>, transform_indices = @transform_1, window_bounds = array<i64: 32, 32>}, {pipeline_mode = #tpu.pipeline_mode<synchronous>, transform_indices = @transform_2, window_bounds = array<i64: 32, 1>}, {pipeline_mode = #tpu.pipeline_mode<synchronous>, transform_indices = @transform_3, window_bounds = array<i64: 8, 32>}, {pipeline_mode = #tpu.pipeline_mode<synchronous>, transform_indices = @transform_4, window_bounds = array<i64: 8, 1>}, {transform_indices = @transform_5, window_bounds = array<i64: 8, 8>}]} {
    %c0 = arith.constant 0 : index
    %c0_0 = arith.constant 0 : index
    %0 = vector.load %arg1[%c0, %c0_0] : memref<8x32xf32, #tpu.memory_space<vmem>>, vector<8x32xf32>
    %1 = arith.truncf %0 : vector<8x32xf32> to vector<8x32xbf16>
    %c0_1 = arith.constant 0 : index
    %c0_2 = arith.constant 0 : index
    %2 = vector.load %arg2[%c0_1, %c0_2] : memref<32x32xbf16, #tpu.memory_space<vmem>>, vector<32x32xbf16>
    %cst = arith.constant dense<0.000000e+00> : vector<32x8xf32>
    %3 = tpu.matmul %2, %1, %cst {dimension_numbers = #tpu.dot_dimension_numbers<[1], [1], [0], [0], [0, 0, 1, 0], [], []>} : vector<32x32xbf16>, vector<8x32xbf16>, vector<32x8xf32> -> vector<32x8xf32>
    %c0_3 = arith.constant 0 : index
    %c0_4 = arith.constant 0 : index
    %4 = vector.load %arg3[%c0_3, %c0_4] : memref<32x1xf32, #tpu.memory_space<vmem>>, vector<32x1xf32>
    %5 = vector.broadcast %4 : vector<32x1xf32> to vector<32x8xf32>
    %6 = arith.addf %3, %5 : vector<32x8xf32>
    %cst_5 = arith.constant 0.000000e+00 : f32
    %7 = vector.broadcast %cst_5 : f32 to vector<32x8xf32>
    %8 = arith.maximumf %6, %7 : vector<32x8xf32>
    %c0_6 = arith.constant 0 : index
    %c0_7 = arith.constant 0 : index
    %9 = vector.load %arg4[%c0_6, %c0_7] : memref<8x32xbf16, #tpu.memory_space<vmem>>, vector<8x32xbf16>
    %10 = arith.truncf %8 : vector<32x8xf32> to vector<32x8xbf16>
    %cst_8 = arith.constant dense<0.000000e+00> : vector<8x8xf32>
    %11 = tpu.matmul %9, %10, %cst_8 {dimension_numbers = #tpu.dot_dimension_numbers<[1], [0], [0], [1], [0, 0, 1, 1], [], []>} : vector<8x32xbf16>, vector<32x8xbf16>, vector<8x8xf32> -> vector<8x8xf32>
    %c0_9 = arith.constant 0 : index
    %c0_10 = arith.constant 0 : index
    %12 = vector.load %arg5[%c0_9, %c0_10] : memref<8x1xf32, #tpu.memory_space<vmem>>, vector<8x1xf32>
    %13 = vector.broadcast %12 : vector<8x1xf32> to vector<8x8xf32>
    %14 = arith.addf %11, %13 : vector<8x8xf32>
    %c0_11 = arith.constant 0 : index
    %c0_12 = arith.constant 0 : index
    %15 = vector.load %arg6[%c0_11, %c0_12] : memref<8x8xf32, #tpu.memory_space<vmem>>, vector<8x8xf32>
    tpu.vector_store %arg6[%c0_11, %c0_12], %14 {strides = array<i32>} : memref<8x8xf32, #tpu.memory_space<vmem>>, vector<8x8xf32>,
    return
  }
  func.func @transform_0(%arg0: i32) -> (i32, i32) {
    %c0_i32 = arith.constant 0 : i32
    %c0_i32_0 = arith.constant 0 : i32
    return %arg0, %c0_i32 : i32, i32
  }
  func.func @transform_1(%arg0: i32) -> (i32, i32) {
    %c0_i32 = arith.constant 0 : i32
    %c0_i32_0 = arith.constant 0 : i32
    %c0_i32_1 = arith.constant 0 : i32
    return %c0_i32, %c0_i32_0 : i32, i32
  }
  func.func @transform_2(%arg0: i32) -> (i32, i32) {
    %c0_i32 = arith.constant 0 : i32
    %c0_i32_0 = arith.constant 0 : i32
    %c0_i32_1 = arith.constant 0 : i32
    return %c0_i32, %c0_i32_0 : i32, i32
  }
  func.func @transform_3(%arg0: i32) -> (i32, i32) {
    %c0_i32 = arith.constant 0 : i32
    %c0_i32_0 = arith.constant 0 : i32
    %c0_i32_1 = arith.constant 0 : i32
    return %c0_i32, %c0_i32_0 : i32, i32
  }
  func.func @transform_4(%arg0: i32) -> (i32, i32) {
    %c0_i32 = arith.constant 0 : i32
    %c0_i32_0 = arith.constant 0 : i32
    %c0_i32_1 = arith.constant 0 : i32
    return %c0_i32, %c0_i32_0 : i32, i32
  }
  func.func @transform_5(%arg0: i32) -> (i32, i32) {
    %c0_i32 = arith.constant 0 : i32
    %c0_i32_0 = arith.constant 0 : i32
    return %c0_i32, %arg0 : i32, i32
  }
}

</mosaic_0001>

<bundles_post_ra>
// kernel: dp_split_forward.1
= control target key start
LH: loop header
LB: loop body
LE: loop exit
PB: predicated region body
PF: predicated region fallthrough
CT: control target
= control target key end

     0   :  { %vm61_vm0 = vcmask 261120   ;;  %v215_v1 = vmov 0   ;;  %v216_v11 = vmov 0.0   ;;  %vm217_vm1 = vmmov 0   ;;  %s283_s0 = inlined_call_operand.vmem [shape: f32[8,32], index: 0, kind: input, shape index: {}]   ;;  %s284_s1 = inlined_call_operand.vmem [shape: bf16[32,32], index: 1, kind: input, shape index: {}]   ;;  %s285_s2 = inlined_call_operand.vmem [shape: f32[32,1], index: 2, kind: input, shape index: {}]   ;;  %s286_s4 = inlined_call_operand.vmem [shape: f32[8,1], index: 4, kind: input, shape index: {}]   ;;  %s287_s3 = inlined_call_operand.vmem [shape: bf16[8,32], index: 3, kind: input, shape index: {}]   ;;  %s288_s5 = inlined_call_operand.vmem [shape: f32[8,8], index: 5, kind: output, shape index: {}]  }
   0x1   :  { %v21_v0 = vld [vmem:[%s283_s0] sm:$0xff]  ;;  %211 = vset.pattern.permute.xlu0 %v215_v1  ;;  %212 = vset.pattern.permute.xlu1 %v215_v1  ;;  %v29_v6 = vld [vmem:[%s285_s2 + $0x10] sm:$0xff]  ;;  %v28_v7 = vld [vmem:[%s285_s2 + $0x8] sm:$0xff]  ;;  %vm176_vm2 = vcmask 64512  }
   0x2   :  { %v22_v2 = vpack.c.bf16 %v21_v0, %v21_v0  ;;  %v213_v3 = vld [vmem:[%s284_s1] sm:$0xff]   ;;  %43 = vperm.xlu1 %212, %v29_v6   ;;  %v30_v8 = vld [vmem:[%s285_s2 + $0x18] sm:$0xff]  ;;  %v214_v9 = vld [vmem:[%s284_s1 + $0x8] sm:$0xff]   ;;  %199 = vmatprep.subr.bf16.mxu1 %v216_v11 }
   0x3   :  { %v27_v4 = vld [vmem:[%s285_s2] sm:$0xff]  ;;  %195 = vmatprep.mubr.msk.bf16.mxu0 %vm61_vm0, %v213_v3  ;;  %203 = vmatprep.mubr.msk.bf16.mxu1 %vm217_vm1, %v216_v11 }
   0x4   :  { %207 = vmatprep.subr.msk.bf16.mxu0 %vm61_vm0, %v22_v2  ;;  %v69_v5 = vsel %vm61_vm0, %v22_v2, 0  ;;  %33 = vperm.xlu0 %211, %v27_v4   ;;  %v127_v10 = vld [vmem:[%s286_s4] sm:$0xff] }
   0x5   :  { %194 = vmatpush3.bf16.xpose.msra.mxu0 %v69_v5  ;;  %v124_v30 = vld [vmem:[%s287_s3] sm:$0xf] }
   0x6   :  { %48 = vperm.xlu1 %212, %v30_v8  }
   0x8   :  { %38 = vperm.xlu0 %211, %v28_v7  }
   0xc   :  { %196 = vmatmul.mubr.msk.bf16.vlgmr.msra.gmra.mrb[0].mxu0 %vm61_vm0, %v214_v9  ;;  %130 = vperm.xlu0 %211, %v127_v10  }
  0x81   :  { %v44_v12 = vpop.permute.xlu1 %43 }
  0x83   :  { %v34_v13 = vpop.permute.xlu0 %33 }
  0x85   :  { %v49_v15 = vpop.permute.xlu1 %48 }
  0x87   :  { %v39_v20 = vpop.permute.xlu0 %38 }
  0x8b   :  { %v131_v31 = vpop.permute.xlu0 %130 }
  0xdf   :  { %v197_v14 = vpop.f32.mrb[0].mxu0 }
  0xe0   :  { %v114_v16 = vadd.f32 %v197_v14, %v44_v12  ;;  %v105_v17 = vpop.f32.mrb[1].mxu0 }
  0xe1   :  { %v106_v18 = vadd.f32 %v105_v17, %v34_v13  ;;  %v198_v19 = vpop.f32.mrb[2].mxu0 }
  0xe2   :  { %v117_v21 = vadd.f32 %v198_v19, %v49_v15  ;;  %v108_v22 = vpop.f32.mrb[3].mxu0  ;;  %v122_v24 = vmax.f32 %v114_v16, 0.0 }
  0xe3   :  { %v109_v23 = vadd.f32 %v108_v22, %v39_v20  ;;  %v120_v26 = vmax.f32 %v106_v18, 0.0 }
  0xe4   :  { %v123_v25 = vmax.f32 %v117_v21, 0.0 }
  0xe5   :  { %v121_v27 = vmax.f32 %v109_v23, 0.0 }
  0xe6   :  { %v126_v28 = vpack.c.bf16 %v123_v25, %v122_v24 }
  0xe7   :  { %v125_v29 = vpack.c.bf16 %v121_v27, %v120_v26 }
  0xe9   :  { %200 = vmatpush3.bf16.msra.mxu1 %v125_v29 }
  0xea   :  { %201 = vmatprep.subr.bf16.mxu1 %v216_v11 }
  0xed   :  { %202 = vmatpush3.bf16.msra.mxu1 %v126_v28 }
  0xf0   :  { %204 = vmatmul.mubr.msk.bf16.vlgmr.msra.gmra.mrb[0].mxu1 %vm61_vm0, %v124_v30 }
 0x1c3   :  { %v170_v32 = vpop.f32.mrb[0].mxu1 }
 0x1c4   :  { %v171_v33 = vadd.f32 %v170_v32, %v131_v31  ;;  %v205_v34 = vpop.f32.mrb[1].mxu1 }
 0x1c5   :  { %v173_v35 = vpop.f32.mrb[2].mxu1 }
 0x1c6   :  { %177 = vst.msk [vmem:[%s288_s5] sm:$0xff] %vm176_vm2, %v171_v33  ;;  %v206_v36 = vpop.f32.mrb[3].mxu1 }

</bundles_post_ra>
